<compile_context>
chip_gen: v6e
topology: v6e:2x2x1
jax: 0.10.0
libtpu: 0.0.40
codegen_flags: <defaults>
</compile_context>

<pallas_src>
import jax
import jax.numpy as jnp
from jax.experimental import pallas as pl
from jax.experimental.pallas import tpu as pltpu


# Below this size the kernel-launch + DMA setup overhead dominates; view is
# metadata-only anyway, so just reshape.
_SMALL_BYTES = 1 << 20  # 1 MiB


def _resolve_size(numel, size):
    """Mirror torch.view's handling of a single -1 dimension."""
    size = list(size)
    if size.count(-1) > 1:
        raise ValueError("only one dimension can be inferred")
    if -1 in size:
        known = 1
        for s in size:
            if s != -1:
                known *= s
        if known == 0 or numel % known != 0:
            raise ValueError(f"shape {size} is invalid for input of size {numel}")
        size[size.index(-1)] = numel // known
    prod = 1
    for s in size:
        prod *= s
    if prod != numel:
        raise ValueError(f"shape {size} is invalid for input of size {numel}")
    return tuple(size)


def _dma_copy_kernel(x_hbm_ref, o_hbm_ref, sem):
    # One full-array HBM->HBM DMA: no VMEM staging, no grid, no per-tile
    # vld/vst traffic.  The DMA engine handles the byte movement.
    copy = pltpu.make_async_copy(x_hbm_ref, o_hbm_ref, sem)
    copy.start()
    copy.wait()


def _pallas_identity_copy(x):
    """Physical copy of `x` via a single HBM->HBM async DMA."""
    return pl.pallas_call(
        _dma_copy_kernel,
        out_shape=jax.ShapeDtypeStruct(x.shape, x.dtype),
        in_specs=[pl.BlockSpec(memory_space=pl.ANY)],
        out_specs=pl.BlockSpec(memory_space=pl.ANY),
        scratch_shapes=[pltpu.SemaphoreType.DMA],
    )(x)


def view_pallas(x, size, force_copy=False):
    """Pallas implementation of torch.Tensor.view(size)."""
    numel = x.size
    out_shape = _resolve_size(numel, size)
    nbytes = numel * jnp.dtype(x.dtype).itemsize

    if not force_copy and nbytes < _SMALL_BYTES:
        # view is metadata-only; for small slabs the reshape path is strictly
        # faster than any kernel launch.
        return jnp.reshape(x, out_shape)

    copied = _pallas_identity_copy(x)
    # Final shape is applied to the copied buffer (metadata / single layout
    # change at most — unavoidable for presenting the new shape).
    return jnp.reshape(copied, out_shape)


class View:
    """JAX/Pallas counterpart of the PyTorch View module."""

    def __init__(self, size):
        self.size = size

    def __call__(self, tensor):
        return view_pallas(tensor, self.size)


if __name__ == "__main__":
    key = jax.random.PRNGKey(0)

    # NCHW input, as the PyTorch module would typically see from a conv stack.
    x = jax.random.normal(key, (2, 4, 16, 16), dtype=jnp.float32)

    # Flatten conv features per batch element: (2,4,16,16) -> (2, 1024).
    mod = View((2, -1))
    y = jax.block_until_ready(mod(x))
    ref = jnp.reshape(x, (2, -1))
    assert y.shape == ref.shape == (2, 1024), y.shape
    assert y.dtype == x.dtype
    assert bool(jnp.all(y == ref))

    # Exercise the Pallas HBM->HBM DMA path explicitly on the same input.
    y_forced = jax.block_until_ready(view_pallas(x, (2, -1), force_copy=True))
    assert y_forced.shape == ref.shape
    assert bool(jnp.all(y_forced == ref))

    # Full flatten with -1 inference on a tensor large enough (2 MiB) to take
    # the DMA-copy path through the size heuristic.
    x2 = jax.random.normal(jax.random.PRNGKey(1), (4, 32, 64, 64), dtype=jnp.float32)
    y2 = jax.block_until_ready(View((-1,))(x2))
    ref2 = jnp.reshape(x2, (-1,))
    assert y2.shape == ref2.shape
    assert bool(jnp.all(y2 == ref2))

    # bf16 input (no sublane-packing concerns: the DMA path is dtype-agnostic).
    x3 = jax.random.normal(jax.random.PRNGKey(2), (2, 8, 32, 32), dtype=jnp.bfloat16)
    y3 = jax.block_until_ready(view_pallas(x3, (2, -1), force_copy=True))
    ref3 = jnp.reshape(x3, (2, -1))
    assert y3.shape == ref3.shape and y3.dtype == x3.dtype
    assert bool(jnp.all(y3 == ref3))

    print("KERNEL_OK")
</pallas_src>

<mosaic_0001>
module attributes {stable_mosaic.version = 11 : i64} {
  func.func @_dma_copy_kernel(%arg0: memref<2x4x16x16xf32, #tpu.memory_space<any>>, %arg1: memref<2x4x16x16xf32, #tpu.memory_space<any>>, %arg2: memref<!tpu.dma_semaphore, #tpu.memory_space<semaphore_mem>>) attributes {dimension_semantics = [], scalar_prefetch = 0 : i64, scratch_operands = 1 : i64, tpu.core_type = #tpu.core_type<tc>} {
    tpu.enqueue_dma source(%arg0 : memref<2x4x16x16xf32, #tpu.memory_space<any>>) target(%arg1 : memref<2x4x16x16xf32, #tpu.memory_space<any>>) target_semaphore(%arg2 : memref<!tpu.dma_semaphore, #tpu.memory_space<semaphore_mem>>)
    tpu.wait_dma2 semaphore(%arg2 : memref<!tpu.dma_semaphore, #tpu.memory_space<semaphore_mem>>) src(%arg0 : memref<2x4x16x16xf32, #tpu.memory_space<any>>) dst(%arg1 : memref<2x4x16x16xf32, #tpu.memory_space<any>>)
    return
  }
}

</mosaic_0001>

<bundles_post_ra>
// kernel: tpu_custom_call.1
= control target key start
LH: loop header
LB: loop body
LE: loop exit
PB: predicated region body
PF: predicated region fallthrough
CT: control target
= control target key end

     0   :  { %s30_s6 = smov [#allocation2]   ;;  %s31_s7 = smov 131072   ;;  %s49_s0 = inlined_call_operand.hbm [shape: f32[2,4,16,16], index: 0, kind: input, shape index: {}]   ;;  %s50_s1 = inlined_call_operand.hbm [shape: f32[2,4,16,16], index: 1, kind: output, shape index: {}]  }
   0x1   :  { %s32_s8 = smov 0  }
   0x2   :  { %12 = dma.general %s49_s0, 2048, %s50_s1, %s30_s6, %s31_s7, [#allocation4], %s32_s8, 0  }
   0x3   :  { %28 = dma.done.wait [#allocation2], 2048 }
   0x4   :  { %29 = vsyncadd [#allocation2], 4294965248 }
   0x5   :  { %18 = vsyncmov [#allocation2] }
   0x8   :  { %s19_s13 = vpop.sfrf %18 }
   0x9   :  { %p24_p0 = scmp.ne.s32.totalorder %s19_s13, 0 }
   0xb   :  { %23 = shalt.err (%p24_p0)  }

</bundles_post_ra>
